<compile_context>
chip_gen: v7x
topology: tpu7x:2x2x1
jax: 0.10.0
libtpu: 0.0.40
codegen_flags: <defaults>
</compile_context>

<pallas_src>
import functools

import jax
import jax.numpy as jnp
from jax.experimental import pallas as pl
from jax.experimental.pallas import tpu as pltpu

LANES = 128
MAX_TILE_ROWS = 1024  # f32: 1024 * 128 * 4 B = 512 KiB per in/out block


def _hash_u32(x):
    """lowbias32 integer finalizer: uint32 counter -> well-mixed uint32."""
    x = x ^ (x >> 16)
    x = x * jnp.uint32(0x7FEB352D)
    x = x ^ (x >> 15)
    x = x * jnp.uint32(0x846CA68B)
    x = x ^ (x >> 16)
    return x


# Acklam's rational approximation of the inverse normal CDF (rel err ~1e-9,
# i.e. exact at f32).  Only log / sqrt / mul / add / div / where — all of
# which have Mosaic lowerings (no sin/cos needed, unlike Box-Muller).
_A = (-3.969683028665376e+01, 2.209460984245205e+02, -2.759285104469687e+02,
      1.383577518672690e+02, -3.066479806614716e+01, 2.506628277459239e+00)
_B = (-5.447609879822406e+01, 1.615858368580409e+02, -1.556989798598866e+02,
      6.680131188771972e+01, -1.328068155288572e+01)
_C = (-7.784894002430293e-03, -3.223964580411365e-01, -2.400758277161838e+00,
      -2.549732539343734e+00, 4.374664141464968e+00, 2.938163982698783e+00)
_D = (7.784695709041462e-03, 3.224671290700398e-01, 2.445134137142996e+00,
      3.754408661907416e+00)
_P_LOW = 0.02425


def _norm_icdf(p):
    """Inverse standard-normal CDF of p in (0, 1), f32, branchless."""
    a0, a1, a2, a3, a4, a5 = _A
    b0, b1, b2, b3, b4 = _B
    c0, c1, c2, c3, c4, c5 = _C
    d0, d1, d2, d3 = _D

    # central region
    q = p - 0.5
    r = q * q
    num_c = (((((a0 * r + a1) * r + a2) * r + a3) * r + a4) * r + a5) * q
    den_c = ((((b0 * r + b1) * r + b2) * r + b3) * r + b4) * r + 1.0
    x_central = num_c / den_c

    # tails (symmetric; evaluate on min(p, 1-p), then fix the sign)
    p_tail = jnp.maximum(jnp.minimum(p, 1.0 - p), 1e-30)
    qt = jnp.sqrt(-2.0 * jnp.log(p_tail))
    num_t = ((((c0 * qt + c1) * qt + c2) * qt + c3) * qt + c4) * qt + c5
    den_t = (((d0 * qt + d1) * qt + d2) * qt + d3) * qt + 1.0
    x_tail = num_t / den_t                       # negative (lower-tail form)
    x_tail = jnp.where(p < 0.5, x_tail, -x_tail)

    in_tail = jnp.logical_or(p < _P_LOW, p > 1.0 - _P_LOW)
    return jnp.where(in_tail, x_tail, x_central)


def _noise_kernel(seed_ref, x_ref, o_ref, *, mean, std, tile_rows):
    # seed_ref: SMEM int32[1] scalar-prefetch arg.
    # x_ref / o_ref: VMEM (tile_rows, 128) blocks.
    block_rows, block_lanes = x_ref.shape

    # Global element index of every slot in this block (uint32 counter).
    row = jax.lax.broadcasted_iota(jnp.int32, (block_rows, block_lanes), 0)
    lane = jax.lax.broadcasted_iota(jnp.int32, (block_rows, block_lanes), 1)
    block_off = jnp.uint32(tile_rows) * pl.program_id(0).astype(jnp.uint32)
    idx = (block_off + row.astype(jnp.uint32)) * jnp.uint32(block_lanes) \
        + lane.astype(jnp.uint32)

    seed = seed_ref[0].astype(jnp.uint32)
    bits = _hash_u32(idx ^ seed)

    # 24-bit uniform strictly inside (0, 1), then inverse-CDF -> N(0, 1).
    # (Compute stays f32; on v6e/v7x a bf16 path would halve vreg pressure
    #  but v5e has no bf16 VPU/EUP, so keep the portable f32 path.)
    u = ((bits >> 8).astype(jnp.int32).astype(jnp.float32) + 0.5) \
        * (1.0 / 16777216.0)
    z = _norm_icdf(u)

    noisy = x_ref[...].astype(jnp.float32) + (z * std + mean)
    o_ref[...] = noisy.astype(o_ref.dtype)


def _apply_noise_kernel(x, seed, mean, std):
    orig_shape = x.shape
    orig_dtype = x.dtype

    flat = x.reshape(-1)
    n = flat.shape[0]

    rem = n % LANES
    padded = rem != 0
    if padded:
        # TODO(synk): replace this pad+slice with a masked tail store when the
        # element count is not a multiple of 128 (two extra HBM passes here).
        flat = jnp.pad(flat, (0, LANES - rem))
    rows = flat.shape[0] // LANES
    x2d = flat.reshape(rows, LANES)

    # Tile rows: full array if small, else 1024-row (0.5 MiB f32) blocks.
    # 1024 is a multiple of 8 so the (8, 128) block constraint holds; Pallas
    # masks the partial final block when rows % tile_rows != 0.
    tile_rows = rows if rows <= MAX_TILE_ROWS else MAX_TILE_ROWS
    grid = (pl.cdiv(rows, tile_rows),)

    kernel = functools.partial(
        _noise_kernel, mean=float(mean), std=float(std), tile_rows=tile_rows)

    out2d = pl.pallas_call(
        kernel,
        out_shape=jax.ShapeDtypeStruct((rows, LANES), orig_dtype),
        grid_spec=pltpu.PrefetchScalarGridSpec(
            num_scalar_prefetch=1,
            grid=grid,
            in_specs=[pl.BlockSpec((tile_rows, LANES),
                                   lambda i, seed_ref: (i, 0))],
            out_specs=pl.BlockSpec((tile_rows, LANES),
                                   lambda i, seed_ref: (i, 0)),
        ),
        compiler_params=pltpu.CompilerParams(
            dimension_semantics=("parallel",),   # shards across TCs on v7x
        ),
    )(seed, x2d)

    out = out2d
    if padded:
        out = out.reshape(-1)[:n]
    return out.reshape(orig_shape)


def multiplicative_gaussian_noise(x, key, *, probability=1.0, mean=0.0, std=1.0):
    """Pallas equivalent of MultiplicativeGaussianNoise.forward."""
    p = float(probability)
    if p <= 0.0:
        return x                                  # statically never applied

    k_gate, k_seed = jax.random.split(key)
    seed = jax.random.randint(k_seed, (1,), 0, jnp.iinfo(jnp.int32).max,
                              dtype=jnp.int32)

    def _apply(xx):
        return _apply_noise_kernel(xx, seed, mean, std)

    if p >= 1.0:
        return _apply(x)                          # statically always applied

    gate = jnp.float32(p) > jax.random.uniform(k_gate, (), dtype=jnp.float32)
    # Identity branch = no kernel launch, no HBM pass.
    return jax.lax.cond(gate, _apply, lambda xx: xx, x)


if __name__ == "__main__":
    key = jax.random.PRNGKey(0)
    k_in, k_fwd = jax.random.split(key)

    # Small NCHW input, consistent with an image-augmentation module.
    x = jax.random.normal(k_in, (2, 4, 16, 16), dtype=jnp.float32)

    # probability=1.0 (module default) -> noise always applied
    y = multiplicative_gaussian_noise(x, k_fwd, probability=1.0, mean=0.0, std=1.0)
    y = jax.block_until_ready(y)
    assert y.shape == x.shape and y.dtype == x.dtype
    assert not bool(jnp.allclose(y, x))

    # added noise should be roughly N(0, 1)
    diff = (y - x).reshape(-1)
    assert abs(float(jnp.mean(diff))) < 0.25
    assert 0.75 < float(jnp.std(diff)) < 1.25

    # probability=0.0 -> identity (no kernel launch at all)
    y_id = multiplicative_gaussian_noise(x, k_fwd, probability=0.0)
    assert bool(jnp.allclose(jax.block_until_ready(y_id), x))

    # 0 < probability < 1 -> gated via lax.cond; just check it runs
    y_p = multiplicative_gaussian_noise(x, k_fwd, probability=0.5)
    y_p = jax.block_until_ready(y_p)
    assert y_p.shape == x.shape and y_p.dtype == x.dtype

    print("KERNEL_OK")
</pallas_src>

<mosaic_0001>
module attributes {stable_mosaic.version = 11 : i64} {
  func.func @_noise_kernel(%arg0: i32, %arg1: memref<1xi32, #tpu.memory_space<smem>>, %arg2: memref<16x128xf32, #tpu.memory_space<vmem>>, %arg3: memref<16x128xf32, #tpu.memory_space<vmem>>) attributes {dimension_semantics = [#tpu.dimension_semantics<parallel>], iteration_bounds = array<i64: 1>, scalar_prefetch = 1 : i64, scratch_operands = 0 : i64, tpu.core_type = #tpu.core_type<tc>, window_params = [{transform_indices = @transform_0, window_bounds = array<i64: 16, 128>}, {transform_indices = @transform_1, window_bounds = array<i64: 16, 128>}]} {
    %0 = tpu.iota {dimensions = array<i32: 0>} : vector<16x128xi32>
    %1 = tpu.iota {dimensions = array<i32: 1>} : vector<16x128xi32>
    %c16_i32 = arith.constant 16 : i32
    %2 = arith.muli %c16_i32, %arg0 : i32
    %3 = vector.broadcast %2 : i32 to vector<16x128xi32>
    %4 = arith.addi %3, %0 : vector<16x128xi32>
    %c128_i32 = arith.constant 128 : i32
    %5 = vector.broadcast %c128_i32 : i32 to vector<16x128xi32>
    %6 = arith.muli %4, %5 : vector<16x128xi32>
    %7 = arith.addi %6, %1 : vector<16x128xi32>
    %c0 = arith.constant 0 : index
    %8 = memref.load %arg1[%c0] : memref<1xi32, #tpu.memory_space<smem>>
    %9 = vector.broadcast %8 : i32 to vector<16x128xi32>
    %10 = arith.xori %7, %9 : vector<16x128xi32>
    %c16_i32_0 = arith.constant 16 : i32
    %11 = vector.broadcast %c16_i32_0 : i32 to vector<16x128xi32>
    %12 = arith.shrui %10, %11 : vector<16x128xi32>
    %13 = arith.xori %10, %12 : vector<16x128xi32>
    %c2146121005_i32 = arith.constant 2146121005 : i32
    %14 = vector.broadcast %c2146121005_i32 : i32 to vector<16x128xi32>
    %15 = arith.muli %13, %14 : vector<16x128xi32>
    %c15_i32 = arith.constant 15 : i32
    %16 = vector.broadcast %c15_i32 : i32 to vector<16x128xi32>
    %17 = arith.shrui %15, %16 : vector<16x128xi32>
    %18 = arith.xori %15, %17 : vector<16x128xi32>
    %c-2073254261_i32 = arith.constant -2073254261 : i32
    %19 = vector.broadcast %c-2073254261_i32 : i32 to vector<16x128xi32>
    %20 = arith.muli %18, %19 : vector<16x128xi32>
    %c16_i32_1 = arith.constant 16 : i32
    %21 = vector.broadcast %c16_i32_1 : i32 to vector<16x128xi32>
    %22 = arith.shrui %20, %21 : vector<16x128xi32>
    %23 = arith.xori %20, %22 : vector<16x128xi32>
    %c8_i32 = arith.constant 8 : i32
    %24 = vector.broadcast %c8_i32 : i32 to vector<16x128xi32>
    %25 = arith.shrui %23, %24 : vector<16x128xi32>
    %26 = arith.sitofp %25 : vector<16x128xi32> to vector<16x128xf32>
    %cst = arith.constant 5.000000e-01 : f32
    %27 = vector.broadcast %cst : f32 to vector<16x128xf32>
    %28 = arith.addf %26, %27 : vector<16x128xf32>
    %cst_2 = arith.constant 5.96046448E-8 : f32
    %29 = vector.broadcast %cst_2 : f32 to vector<16x128xf32>
    %30 = arith.mulf %28, %29 : vector<16x128xf32>
    %cst_3 = arith.constant 5.000000e-01 : f32
    %31 = vector.broadcast %cst_3 : f32 to vector<16x128xf32>
    %32 = arith.subf %30, %31 : vector<16x128xf32>
    %33 = arith.mulf %32, %32 : vector<16x128xf32>
    %cst_4 = arith.constant -39.6968307 : f32
    %34 = vector.broadcast %cst_4 : f32 to vector<16x128xf32>
    %35 = arith.mulf %34, %33 : vector<16x128xf32>
    %cst_5 = arith.constant 220.946106 : f32
    %36 = vector.broadcast %cst_5 : f32 to vector<16x128xf32>
    %37 = arith.addf %35, %36 : vector<16x128xf32>
    %38 = arith.mulf %37, %33 : vector<16x128xf32>
    %cst_6 = arith.constant -275.928497 : f32
    %39 = vector.broadcast %cst_6 : f32 to vector<16x128xf32>
    %40 = arith.addf %38, %39 : vector<16x128xf32>
    %41 = arith.mulf %40, %33 : vector<16x128xf32>
    %cst_7 = arith.constant 138.357758 : f32
    %42 = vector.broadcast %cst_7 : f32 to vector<16x128xf32>
    %43 = arith.addf %41, %42 : vector<16x128xf32>
    %44 = arith.mulf %43, %33 : vector<16x128xf32>
    %cst_8 = arith.constant -30.6647987 : f32
    %45 = vector.broadcast %cst_8 : f32 to vector<16x128xf32>
    %46 = arith.addf %44, %45 : vector<16x128xf32>
    %47 = arith.mulf %46, %33 : vector<16x128xf32>
    %cst_9 = arith.constant 2.50662827 : f32
    %48 = vector.broadcast %cst_9 : f32 to vector<16x128xf32>
    %49 = arith.addf %47, %48 : vector<16x128xf32>
    %50 = arith.mulf %49, %32 : vector<16x128xf32>
    %cst_10 = arith.constant -54.4760971 : f32
    %51 = vector.broadcast %cst_10 : f32 to vector<16x128xf32>
    %52 = arith.mulf %51, %33 : vector<16x128xf32>
    %cst_11 = arith.constant 161.585831 : f32
    %53 = vector.broadcast %cst_11 : f32 to vector<16x128xf32>
    %54 = arith.addf %52, %53 : vector<16x128xf32>
    %55 = arith.mulf %54, %33 : vector<16x128xf32>
    %cst_12 = arith.constant -155.698975 : f32
    %56 = vector.broadcast %cst_12 : f32 to vector<16x128xf32>
    %57 = arith.addf %55, %56 : vector<16x128xf32>
    %58 = arith.mulf %57, %33 : vector<16x128xf32>
    %cst_13 = arith.constant 66.8013153 : f32
    %59 = vector.broadcast %cst_13 : f32 to vector<16x128xf32>
    %60 = arith.addf %58, %59 : vector<16x128xf32>
    %61 = arith.mulf %60, %33 : vector<16x128xf32>
    %cst_14 = arith.constant -13.2806816 : f32
    %62 = vector.broadcast %cst_14 : f32 to vector<16x128xf32>
    %63 = arith.addf %61, %62 : vector<16x128xf32>
    %64 = arith.mulf %63, %33 : vector<16x128xf32>
    %cst_15 = arith.constant 1.000000e+00 : f32
    %65 = vector.broadcast %cst_15 : f32 to vector<16x128xf32>
    %66 = arith.addf %64, %65 : vector<16x128xf32>
    %67 = arith.divf %50, %66 : vector<16x128xf32>
    %cst_16 = arith.constant 1.000000e+00 : f32
    %68 = vector.broadcast %cst_16 : f32 to vector<16x128xf32>
    %69 = arith.subf %68, %30 : vector<16x128xf32>
    %70 = arith.minimumf %30, %69 : vector<16x128xf32>
    %cst_17 = arith.constant 1.000000e-30 : f32
    %71 = vector.broadcast %cst_17 : f32 to vector<16x128xf32>
    %72 = arith.maximumf %70, %71 : vector<16x128xf32>
    %73 = math.log %72 : vector<16x128xf32>
    %cst_18 = arith.constant -2.000000e+00 : f32
    %74 = vector.broadcast %cst_18 : f32 to vector<16x128xf32>
    %75 = arith.mulf %74, %73 : vector<16x128xf32>
    %76 = math.sqrt %75 : vector<16x128xf32>
    %cst_19 = arith.constant -0.0077848942 : f32
    %77 = vector.broadcast %cst_19 : f32 to vector<16x128xf32>
    %78 = arith.mulf %77, %76 : vector<16x128xf32>
    %cst_20 = arith.constant -0.322396457 : f32
    %79 = vector.broadcast %cst_20 : f32 to vector<16x128xf32>
    %80 = arith.addf %78, %79 : vector<16x128xf32>
    %81 = arith.mulf %80, %76 : vector<16x128xf32>
    %cst_21 = arith.constant -2.40075827 : f32
    %82 = vector.broadcast %cst_21 : f32 to vector<16x128xf32>
    %83 = arith.addf %81, %82 : vector<16x128xf32>
    %84 = arith.mulf %83, %76 : vector<16x128xf32>
    %cst_22 = arith.constant -2.54973245 : f32
    %85 = vector.broadcast %cst_22 : f32 to vector<16x128xf32>
    %86 = arith.addf %84, %85 : vector<16x128xf32>
    %87 = arith.mulf %86, %76 : vector<16x128xf32>
    %cst_23 = arith.constant 4.37466431 : f32
    %88 = vector.broadcast %cst_23 : f32 to vector<16x128xf32>
    %89 = arith.addf %87, %88 : vector<16x128xf32>
    %90 = arith.mulf %89, %76 : vector<16x128xf32>
    %cst_24 = arith.constant 2.938164 : f32
    %91 = vector.broadcast %cst_24 : f32 to vector<16x128xf32>
    %92 = arith.addf %90, %91 : vector<16x128xf32>
    %cst_25 = arith.constant 0.00778469583 : f32
    %93 = vector.broadcast %cst_25 : f32 to vector<16x128xf32>
    %94 = arith.mulf %93, %76 : vector<16x128xf32>
    %cst_26 = arith.constant 0.322467119 : f32
    %95 = vector.broadcast %cst_26 : f32 to vector<16x128xf32>
    %96 = arith.addf %94, %95 : vector<16x128xf32>
    %97 = arith.mulf %96, %76 : vector<16x128xf32>
    %cst_27 = arith.constant 2.44513416 : f32
    %98 = vector.broadcast %cst_27 : f32 to vector<16x128xf32>
    %99 = arith.addf %97, %98 : vector<16x128xf32>
    %100 = arith.mulf %99, %76 : vector<16x128xf32>
    %cst_28 = arith.constant 3.7544086 : f32
    %101 = vector.broadcast %cst_28 : f32 to vector<16x128xf32>
    %102 = arith.addf %100, %101 : vector<16x128xf32>
    %103 = arith.mulf %102, %76 : vector<16x128xf32>
    %cst_29 = arith.constant 1.000000e+00 : f32
    %104 = vector.broadcast %cst_29 : f32 to vector<16x128xf32>
    %105 = arith.addf %103, %104 : vector<16x128xf32>
    %106 = arith.divf %92, %105 : vector<16x128xf32>
    %cst_30 = arith.constant 5.000000e-01 : f32
    %107 = vector.broadcast %cst_30 : f32 to vector<16x128xf32>
    %108 = arith.cmpf olt, %30, %107 : vector<16x128xf32>
    %cst_31 = arith.constant 0.000000e+00 : f32
    %109 = vector.broadcast %cst_31 : f32 to vector<16x128xf32>
    %110 = arith.subf %109, %106 : vector<16x128xf32>
    %111 = arith.select %108, %106, %110 : vector<16x128xi1>, vector<16x128xf32>
    %cst_32 = arith.constant 2.425000e-02 : f32
    %112 = vector.broadcast %cst_32 : f32 to vector<16x128xf32>
    %113 = arith.cmpf olt, %30, %112 : vector<16x128xf32>
    %cst_33 = arith.constant 9.757500e-01 : f32
    %114 = vector.broadcast %cst_33 : f32 to vector<16x128xf32>
    %115 = arith.cmpf ogt, %30, %114 : vector<16x128xf32>
    %116 = arith.ori %113, %115 : vector<16x128xi1>
    %117 = arith.select %116, %111, %67 : vector<16x128xi1>, vector<16x128xf32>
    %c0_34 = arith.constant 0 : index
    %c0_35 = arith.constant 0 : index
    %118 = vector.load %arg2[%c0_34, %c0_35] : memref<16x128xf32, #tpu.memory_space<vmem>>, vector<16x128xf32>
    %cst_36 = arith.constant 1.000000e+00 : f32
    %119 = vector.broadcast %cst_36 : f32 to vector<16x128xf32>
    %120 = arith.mulf %117, %119 : vector<16x128xf32>
    %cst_37 = arith.constant 0.000000e+00 : f32
    %121 = vector.broadcast %cst_37 : f32 to vector<16x128xf32>
    %122 = arith.addf %120, %121 : vector<16x128xf32>
    %123 = arith.addf %118, %122 : vector<16x128xf32>
    %c0_38 = arith.constant 0 : index
    %c0_39 = arith.constant 0 : index
    %124 = vector.load %arg3[%c0_38, %c0_39] : memref<16x128xf32, #tpu.memory_space<vmem>>, vector<16x128xf32>
    tpu.vector_store %arg3[%c0_38, %c0_39], %123 {strides = array<i32>} : memref<16x128xf32, #tpu.memory_space<vmem>>, vector<16x128xf32>,
    return
  }
  func.func @transform_0(%arg0: i32, %arg1: memref<1xi32, #tpu.memory_space<smem>>) -> (i32, i32) {
    %c0_i32 = arith.constant 0 : i32
    %c0_i32_0 = arith.constant 0 : i32
    return %arg0, %c0_i32 : i32, i32
  }
  func.func @transform_1(%arg0: i32, %arg1: memref<1xi32, #tpu.memory_space<smem>>) -> (i32, i32) {
    %c0_i32 = arith.constant 0 : i32
    %c0_i32_0 = arith.constant 0 : i32
    return %arg0, %c0_i32 : i32, i32
  }
}

</mosaic_0001>

<bundles_post_ra>
// kernel: tpu_custom_call.1
= control target key start
LH: loop header
LB: loop body
LE: loop exit
PB: predicated region body
PF: predicated region fallthrough
CT: control target
= control target key end

     0   :  { %8 = vsyncpa [#allocation5], 0  ;;  %s393_s0 = inlined_call_operand.<no memory space> [shape: s32[1], index: 0, kind: input, shape index: {}]   ;;  %s394_s1 = inlined_call_operand.hbm [shape: f32[16,128], index: 1, kind: input, shape index: {}]   ;;  %s395_s2 = inlined_call_operand.hbm [shape: f32[16,128], index: 2, kind: output, shape index: {}]  }
   0x1   :  { %9 = vsyncpa [#allocation6], 0  ;;  %s291_s9 = smov [#allocation4]   ;;  %s243_s13 = scalar_lea.hbm %s394_s1, 256 }
   0x2   :  { %s15_s10 = sshll.u32 %s291_s9, 4  ;;  %p244_p0 = scmp.ne.s32.totalorder %s394_s1, %s243_s13  ;;  %s16_s10 = int_to_ptr.vmem [resolvable:$true] %s15_s10 }
   0x3   :  { %p247_p1 = scmp.lt.u32.totalorder %s243_s13, %s394_s1 }
   0x5   :  { %p249_p2 = pnand %p247_p1, %p244_p0 }
   0x7   :  { %252 = shalt.err (!%p249_p2)
}
   0x8   :  { %s253_s18 = scalar_lea.vmem %s16_s10, 256  ;;  %p258_p4 = scmp.lt.s32.totalorder %s16_s10, %s16_s10 }
   0x9   :  { %p254_p3 = scmp.ne.s32.totalorder %s16_s10, %s253_s18  ;;  %p259_p5 = scmp.lt.s32.totalorder %s253_s18, %s253_s18 }
   0xb   :  { %p260_p6 = por %p259_p5, %p258_p4 }
   0xd   :  { %p261_p7 = pnand %p260_p6, %p254_p3 }
   0xf   :  { %264 = shalt.err (!%p261_p7)
}
  0x10   :  { %s292_s19 = smov 128   ;;  %s293_s20 = smov 8  }
  0x11   :  { %21 = dma.hbm_to_vmem [thread:$0]  %s394_s1, 256, %s16_s10, [#allocation5], %s292_s19, %s292_s19, %s293_s20  }
  0x12   :  { %287 = dma.done.wait [#allocation5], 256  }
  0x13   :  { %288 = vsyncadd [#allocation5], 4294967040  ;;  %v25_v0 = vlaneseq  ;;  %v39_v5 = vstv %s393_s0  ;;  %s294_s0 = smov [#allocation7]  }
  0x14   :  { %s209_s1 = sshll.u32 %s294_s0, 4  ;;  %s210_s1 = int_to_ptr.vmem [resolvable:$true] %s209_s1 }
  0x15   :  { %v26_v1 = vshrl.u32 %v25_v0, 7  ;;  %v29_v2 = vand.u32 127, %v25_v0  ;;  %s265_s25 = scalar_lea.vmem %s210_s1, 256  ;;  %p270_p9 = scmp.lt.s32.totalorder %s210_s1, %s210_s1 }
  0x16   :  { %p266_p8 = scmp.ne.s32.totalorder %s210_s1, %s265_s25  ;;  %p271_p10 = scmp.lt.s32.totalorder %s265_s25, %s265_s25 }
  0x17   :  { %v34_v3 = vmul.u32 128, %v26_v1  ;;  %v27_v4 = vadd.s32 8, %v26_v1 }
  0x18   :  { %p272_p11 = por %p271_p10, %p270_p9 }
  0x19   :  { %v36_v6 = vadd.s32 %v34_v3, %v29_v2  ;;  %v35_v7 = vmul.u32 128, %v27_v4 }
  0x1a   :  { %p273_p12 = pnand %p272_p11, %p266_p8 }
  0x1b   :  { %v40_v8 = vxor.u32 %v39_v5, %v36_v6  ;;  %v37_v9 = vadd.s32 %v35_v7, %v29_v2 }
  0x1d   :  { %v42_v10 = vshrl.u32 %v40_v8, 16  ;;  %v41_v11 = vxor.u32 %v39_v5, %v37_v9 }
  0x1f   :  { %v44_v12 = vxor.u32 %v42_v10, %v40_v8  ;;  %v43_v13 = vshrl.u32 %v41_v11, 16 }
  0x21   :  { %v46_v14 = vmul.u32 2146121005, %v44_v12  ;;  %v45_v15 = vxor.u32 %v43_v13, %v41_v11 }
  0x23   :  { %v48_v16 = vshrl.u32 %v46_v14, 15  ;;  %v47_v17 = vmul.u32 2146121005, %v45_v15 }
  0x25   :  { %v50_v18 = vxor.u32 %v48_v16, %v46_v14  ;;  %v49_v19 = vshrl.u32 %v47_v17, 15 }
  0x27   :  { %v52_v20 = vmul.u32 2221713035, %v50_v18  ;;  %v51_v21 = vxor.u32 %v49_v19, %v47_v17 }
  0x29   :  { %v54_v22 = vshrl.u32 %v52_v20, 16  ;;  %v53_v23 = vmul.u32 2221713035, %v51_v21 }
  0x2b   :  { %v56_v24 = vxor.u32 %v54_v22, %v52_v20  ;;  %v55_v25 = vshrl.u32 %v53_v23, 16 }
  0x2d   :  { %v58_v26 = vshrl.u32 %v56_v24, 8  ;;  %v57_v27 = vxor.u32 %v55_v25, %v53_v23 }
  0x2f   :  { %v60_v28 = vcvt.s32.f32 %v58_v26  ;;  %v59_v29 = vshrl.u32 %v57_v27, 8 }
  0x31   :  { %v62_v30 = vadd.f32 0.5, %v60_v28  ;;  %v61_v31 = vcvt.s32.f32 %v59_v29 }
  0x33   :  { %v328_v32 = vmul.f32 5.9604645e-08, %v62_v30  ;;  %v63_v33 = vadd.f32 0.5, %v61_v31 }
  0x35   :  { %v116_v34 = vsub.f32 1.0, %v328_v32  ;;  %v331_v35 = vmul.f32 5.9604645e-08, %v63_v33  ;;  %v334_v36 = vadd.f32 -0.5, %v328_v32  ;;  %vm188_vm4 = vcmp.lt.f32.partialorder %v328_v32, 0.02425 }
  0x36   :  { %vm190_vm5 = vcmp.gt.f32.partialorder %v328_v32, 0.97575  ;;  %vm182_vm6 = vcmp.lt.f32.partialorder %v328_v32, 0.5 }
  0x37   :  { %v118_v37 = vmin.f32 %v328_v32, %v116_v34  ;;  %v117_v38 = vsub.f32 1.0, %v331_v35  ;;  %v341_v41 = vmul.f32 %v334_v36, %v334_v36  ;;  %v344_v42 = vadd.f32 -0.5, %v331_v35  ;;  %vm192_vm7 = vmor %vm188_vm4, %vm190_vm5 }
  0x38   :  { %vm189_vm8 = vcmp.lt.f32.partialorder %v331_v35, 0.02425  ;;  %vm191_vm9 = vcmp.gt.f32.partialorder %v331_v35, 0.97575  ;;  %vm183_vm10 = vcmp.lt.f32.partialorder %v331_v35, 0.5 }
  0x39   :  { %v120_v39 = vmax.f32 %v118_v37, 1e-30  ;;  %v119_v40 = vmin.f32 %v331_v35, %v117_v38  ;;  %v92_v44 = vmul.f32 -54.476097, %v341_v41  ;;  %v349_v45 = vmul.f32 %v344_v42, %v344_v42  ;;  %vm193_vm11 = vmor %vm189_vm8, %vm191_vm9 }
  0x3a   :  { %v70_v50 = vmul.f32 -39.69683, %v341_v41 }
  0x3b   :  { %227 = vlog2.f32 %v120_v39  ;;  %v121_v43 = vmax.f32 %v119_v40, 1e-30  ;;  %v94_v46 = vadd.f32 161.58583, %v92_v44  ;;  %v93_v47 = vmul.f32 -54.476097, %v349_v45 }
  0x3c   :  { %v72_v56 = vadd.f32 220.9461, %v70_v50  ;;  %v71_v60 = vmul.f32 -39.69683, %v349_v45 }
  0x3d   :  { %229 = vlog2.f32 %v121_v43  ;;  %v96_v51 = vmul.f32 %v94_v46, %v341_v41  ;;  %v95_v54 = vadd.f32 161.58583, %v93_v47 }
  0x3e   :  { %v74_v61 = vmul.f32 %v72_v56, %v341_v41  ;;  %v73_v0 = vadd.f32 220.9461, %v71_v60 }
  0x3f   :  { %v98_v57 = vadd.f32 -155.69897, %v96_v51  ;;  %v97_v59 = vmul.f32 %v95_v54, %v349_v45 }
  0x40   :  { %v76_v1 = vadd.f32 -275.9285, %v74_v61  ;;  %v75_v7 = vmul.f32 %v73_v0, %v349_v45 }
  0x41   :  { %v100_v62 = vmul.f32 %v98_v57, %v341_v41  ;;  %v99_v63 = vadd.f32 -155.69897, %v97_v59 }
  0x42   :  { %v78_v8 = vmul.f32 %v76_v1, %v341_v41  ;;  %v77_v18 = vadd.f32 -275.9285, %v75_v7 }
  0x43   :  { %v102_v2 = vadd.f32 66.801315, %v100_v62  ;;  %v101_v5 = vmul.f32 %v99_v63, %v349_v45 }
  0x44   :  { %v80_v22 = vadd.f32 138.35776, %v78_v8  ;;  %v79_v29 = vmul.f32 %v77_v18, %v349_v45 }
  0x45   :  { %v228_v48 = vpop.eup %227  ;;  %v104_v9 = vmul.f32 %v102_v2, %v341_v41  ;;  %v103_v13 = vadd.f32 66.801315, %v101_v5 }
  0x46   :  { %v123_v49 = vmul.f32 0.6931472, %v228_v48  ;;  %v82_v37 = vmul.f32 %v80_v22, %v341_v41  ;;  %v81_v47 = vadd.f32 138.35776, %v79_v29 }
  0x47   :  { %v230_v52 = vpop.eup %229  ;;  %v106_v23 = vadd.f32 -13.280682, %v104_v9  ;;  %v105_v27 = vmul.f32 %v103_v13, %v349_v45 }
  0x48   :  { %v126_v53 = vmul.f32 -2.0, %v123_v49  ;;  %v125_v55 = vmul.f32 0.6931472, %v230_v52  ;;  %v84_v52 = vadd.f32 -30.664799, %v82_v37  ;;  %v83_v59 = vmul.f32 %v81_v47, %v349_v45 }
  0x49   :  { %v108_v38 = vmul.f32 %v106_v23, %v341_v41  ;;  %v107_v44 = vadd.f32 -13.280682, %v105_v27  ;;  %v197_v27 = vld [vmem:[#allocation4 + $0x8] sm:$0xff] }
  0x4a   :  { %231 = vrsqrt.f32 %v126_v53  ;;  %v127_v58 = vmul.f32 -2.0, %v125_v55  ;;  %vm130_vm0 = vcmp.eq.f32.partialorder %v126_v53, inf  ;;  %v133_v4 = vand.u32 2147483648, %v126_v53 }
  0x4b   :  { %vm132_vm1 = vcmp.eq.f32.partialorder %v126_v53, 0.0  ;;  %v109_v57 = vmul.f32 %v107_v44, %v349_v45  ;;  %v86_v1 = vmul.f32 %v84_v52, %v341_v41 }
  0x4c   :  { %233 = vrsqrt.f32 %v127_v58  ;;  %vm137_vm2 = vcmp.eq.f32.partialorder %v127_v58, inf  ;;  %v140_v14 = vand.u32 2147483648, %v127_v58  ;;  %vm139_vm3 = vcmp.eq.f32.partialorder %v127_v58, 0.0 }
  0x4d   :  { %v111_v2 = vadd.f32 1.0, %v109_v57  ;;  %v88_v8 = vadd.f32 2.5066283, %v86_v1 }
  0x4f   :  { %v90_v13 = vmul.f32 %v334_v36, %v88_v8 }
  0x54   :  { %v232_v3 = vpop.eup %231 }
  0x55   :  { %v129_v6 = vmul.f32 %v232_v3, %v126_v53 }
  0x56   :  { %v234_v11 = vpop.eup %233 }
  0x57   :  { %v131_v10 = vsel %vm130_vm0, %v126_v53, %v129_v6  ;;  %v136_v17 = vmul.f32 %v234_v11, %v127_v58  ;;  %v110_v53 = vadd.f32 1.0, %v108_v38 }
  0x58   :  { %v134_v12 = vsel %vm132_vm1, %v133_v4, %v131_v10  ;;  %v85_v4 = vadd.f32 -30.664799, %v83_v59 }
  0x59   :  { %v142_v15 = vmul.f32 -0.007784894, %v134_v12  ;;  %v162_v16 = vmul.f32 0.007784696, %v134_v12  ;;  %v138_v21 = vsel %vm137_vm2, %v127_v58, %v136_v17  ;;  %235 = vrcp.f32 %v110_v53 }
  0x5a   :  { %v141_v24 = vsel %vm139_vm3, %v140_v14, %v138_v21  ;;  %v87_v10 = vmul.f32 %v85_v4, %v349_v45  ;;  %v196_v21 = vld [vmem:[#allocation4] sm:$0xff] }
  0x5b   :  { %v144_v19 = vadd.f32 -0.32239646, %v142_v15  ;;  %v164_v20 = vadd.f32 0.32246712, %v162_v16  ;;  %v143_v28 = vmul.f32 -0.007784894, %v141_v24 }
  0x5c   :  { %v163_v30 = vmul.f32 0.007784696, %v141_v24  ;;  %v89_v16 = vadd.f32 2.5066283, %v87_v10 }
  0x5d   :  { %v146_v25 = vmul.f32 %v144_v19, %v134_v12  ;;  %v166_v26 = vmul.f32 %v164_v20, %v134_v12  ;;  %v145_v34 = vadd.f32 -0.32239646, %v143_v28 }
  0x5e   :  { %v165_v39 = vadd.f32 0.32246712, %v163_v30  ;;  %v91_v45 = vmul.f32 %v344_v42, %v89_v16 }
  0x5f   :  { %v148_v31 = vadd.f32 -2.4007583, %v146_v25  ;;  %v168_v33 = vadd.f32 2.4451342, %v166_v26  ;;  %v147_v46 = vmul.f32 %v145_v34, %v141_v24 }
  0x60   :  { %v167_v48 = vmul.f32 %v165_v39, %v141_v24 }
  0x61   :  { %v150_v40 = vmul.f32 %v148_v31, %v134_v12  ;;  %v170_v43 = vmul.f32 %v168_v33, %v134_v12  ;;  %v149_v51 = vadd.f32 -2.4007583, %v147_v46 }
  0x62   :  { %v169_v54 = vadd.f32 2.4451342, %v167_v48 }
  0x63   :  { %v152_v49 = vadd.f32 -2.5497324, %v150_v40  ;;  %v172_v50 = vadd.f32 3.7544086, %v170_v43  ;;  %v151_v58 = vmul.f32 %v149_v51, %v141_v24  ;;  %v236_v15 = vpop.eup %235 }
  0x64   :  { %v171_v60 = vmul.f32 %v169_v54, %v141_v24 }
  0x65   :  { %v154_v55 = vmul.f32 %v152_v49, %v134_v12  ;;  %v174_v56 = vmul.f32 %v172_v50, %v134_v12  ;;  %v153_v62 = vadd.f32 -2.5497324, %v151_v58 }
  0x66   :  { %v173_v0 = vadd.f32 3.7544086, %v171_v60 }
  0x67   :  { %v176_v61 = vadd.f32 1.0, %v174_v56  ;;  %v156_v63 = vadd.f32 4.3746643, %v154_v55  ;;  %v155_v3 = vmul.f32 %v153_v62, %v141_v24 }
  0x68   :  { %v175_v5 = vmul.f32 %v173_v0, %v141_v24 }
  0x69   :  { %237 = vrcp.f32 %v176_v61  ;;  %v158_v6 = vmul.f32 %v156_v63, %v134_v12  ;;  %v157_v9 = vadd.f32 4.3746643, %v155_v3  ;;  %v113_v12 = vmul.f32 %v236_v15, %v90_v13 }
  0x6a   :  { %v177_v7 = vadd.f32 1.0, %v175_v5  ;;  %239 = vrcp.f32 %v111_v2 }
  0x6b   :  { %v160_v11 = vadd.f32 2.938164, %v158_v6  ;;  %v159_v14 = vmul.f32 %v157_v9, %v141_v24 }
  0x6c   :  { %241 = vrcp.f32 %v177_v7 }
  0x6d   :  { %v161_v18 = vadd.f32 2.938164, %v159_v14 }
  0x73   :  { %v238_v41 = vpop.eup %237 }
  0x74   :  { %v179_v17 = vmul.f32 %v238_v41, %v160_v11  ;;  %v240_v20 = vpop.eup %239 }
  0x75   :  { %v115_v26 = vmul.f32 %v240_v20, %v91_v45 }
  0x76   :  { %v184_v19 = vsub.f32 0.0, %v179_v17  ;;  %v242_v36 = vpop.eup %241 }
  0x77   :  { %v181_v24 = vmul.f32 %v242_v36, %v161_v18 }
  0x78   :  { %v186_v22 = vsel %vm182_vm6, %v179_v17, %v184_v19 }
  0x79   :  { %v194_v23 = vsel %vm192_vm7, %v186_v22, %v113_v12  ;;  %v185_v32 = vsub.f32 0.0, %v181_v24 }
  0x7a   :  { %v200_v25 = vadd.f32 %v196_v21, %v194_v23 }
  0x7b   :  { %v187_v42 = vsel %vm183_vm10, %v181_v24, %v185_v32 }
  0x7c   :  { %202 = vst [vmem:[#allocation7] sm:$0xff] %v200_v25  ;;  %v195_v28 = vsel %vm193_vm11, %v187_v42, %v115_v26 }
  0x7d   :  { %v201_v29 = vadd.f32 %v197_v27, %v195_v28 }
  0x7f   :  { %203 = vst [vmem:[#allocation7 + $0x8] sm:$0xff] %v201_v29 }
  0x80   :  { %276 = shalt.err (!%p273_p12)
}
  0x81   :  { %s277_s28 = scalar_lea.hbm %s395_s2, 256 }
  0x82   :  { %p278_p13 = scmp.ne.s32.totalorder %s395_s2, %s277_s28  ;;  %p281_p0 = scmp.lt.u32.totalorder %s277_s28, %s395_s2 }
  0x84   :  { %p283_p1 = pnand %p281_p0, %p278_p13 }
  0x86   :  { %286 = shalt.err (!%p283_p1)
}
  0x87   :  { %215 = dma.vmem_to_hbm [thread:$0]  %s210_s1, 256, %s395_s2, [#allocation6], %s292_s19, %s292_s19, %s293_s20  }
  0x88   :  { %289 = dma.done.wait [#allocation6], 256  }
  0x89   :  { %290 = vsyncadd [#allocation6], 4294967040 }
  0x8a   :  { %219 = vsyncpa [#allocation5], 1 }
  0x8b   :  { %220 = vsyncpa [#allocation6], 1 }

</bundles_post_ra>
